<compile_context>
chip_gen: v7x
topology: tpu7x:2x2x1
jax: 0.10.0
libtpu: 0.0.40
codegen_flags: <defaults>
</compile_context>

<pallas_src>
import functools

import jax
import jax.numpy as jnp
from jax.experimental import pallas as pl
from jax.experimental.pallas import tpu as pltpu


def _branch_out_hw(size, k, p, s):
    return (size + 2 * p - k) // s + 1


def _build_fused_weight(params, stride, kmax, cin):
    """Fuse per-branch (Cout_b, Cin, k, k) weights into one (K', Cout_total) matrix.

    Row order matches the kernel's in-VMEM patch layout:
        K'-index = ((qi*Kq + qj) * s*s + pi*s + pj) * Cin + c
    where (qi*s+pi, qj*s+pj) is the tap offset inside the (padded) kmax window.
    Taps outside a branch's support get zero rows; branch columns are laid out
    in torch.cat(dim=1) order, so one matmul computes all branches.
    """
    s = stride
    Kq = (kmax - 1) // s + 1          # kernel extent in space-to-depth coords
    P = (kmax - s) // 2               # padding of the largest branch
    cout_total = sum(int(w.shape[0]) for (w, _b, _k, _p) in params)
    wf = jnp.zeros((Kq, Kq, s, s, cin, cout_total), jnp.float32)
    col = 0
    for (w, _b, k, p) in params:
        off = P - p                   # offset of this branch's window in the big window
        dimsc = int(w.shape[0])
        wt = jnp.transpose(w, (2, 3, 1, 0))          # (k, k, Cin, dimsc)
        for ti in range(k):
            for tj in range(k):
                di, dj = ti + off, tj + off
                qi, pi = divmod(di, s)
                qj, pj = divmod(dj, s)
                wf = wf.at[qi, qj, pi, pj, :, col:col + dimsc].set(wt[ti, tj])
        col += dimsc
    wf = wf.reshape(Kq * Kq * s * s * cin, cout_total)
    bias = jnp.concatenate([b for (_w, b, _k, _p) in params]).astype(jnp.float32)
    return wf.astype(jnp.bfloat16), bias


@functools.partial(jax.jit, static_argnames=("stride", "kmax"))
def _fused_cross_embed(x, w_fused, bias, *, stride, kmax):
    """x: (N, Cin, H, W) f32  ->  (N, Cout_total, Ho, Wo) f32 (all branches fused)."""
    N, Cin, H, W = x.shape
    s = stride
    P = (kmax - s) // 2
    Kq = (kmax - 1) // s + 1
    Ho = (H + 2 * P - kmax) // s + 1
    Wo = (W + 2 * P - kmax) // s + 1
    Cs = s * s * Cin                  # channels after space-to-depth
    Kp = Kq * Kq * Cs                 # fused contraction size
    Cout = int(w_fused.shape[1])
    assert int(w_fused.shape[0]) == Kp

    # ---- input prep (cheap XLA glue, O(input bytes), ONE transpose) ----------
    # Pad to the largest branch's frame, then space-to-depth so the stride is
    # absorbed into the channel axis: every in-kernel tap slice is contiguous.
    Hp, Wp = s * (Ho + Kq - 1), s * (Wo + Kq - 1)
    xp = jnp.pad(x, ((0, 0), (0, 0),
                     (P, max(0, Hp - P - H)), (P, max(0, Wp - P - W))))
    xp = xp[:, :, :Hp, :Wp]
    Hs, Ws = Hp // s, Wp // s
    x_s2d = xp.reshape(N, Cin, Hs, s, Ws, s)
    x_s2d = jnp.transpose(x_s2d, (0, 2, 4, 3, 5, 1)).reshape(N, Hs, Ws, Cs)
    x_s2d = x_s2d.astype(jnp.bfloat16)            # bf16 operands, f32 accumulate
    b2 = bias.reshape(1, Cout)

    # ---- Pallas kernel: in-VMEM im2col for one output row + one MXU matmul ---
    def kernel(x_ref, w_ref, b_ref, o_ref):
        oy = pl.program_id(1)
        taps = []
        for qi in range(Kq):
            for qj in range(Kq):
                # (Wo, Cs) bf16 — contiguous slice of the resident image block.
                taps.append(x_ref[0, oy + qi, pl.ds(qj, Wo), :])
        patch = jnp.concatenate(taps, axis=-1)                 # (Wo, Kp)
        acc = jnp.dot(patch, w_ref[...],
                      preferred_element_type=jnp.float32)      # (Wo, Cout) f32
        o_ref[0, 0, :, :] = acc + b_ref[...]                   # bias once, f32

    out = pl.pallas_call(
        kernel,
        out_shape=jax.ShapeDtypeStruct((N, Ho, Wo, Cout), jnp.float32),
        grid=(N, Ho),
        in_specs=[
            # Full image per n; block index constant across the oy axis, so the
            # image is DMA'd into VMEM once per n and reused for every row.
            pl.BlockSpec((1, Hs, Ws, Cs), lambda n, t: (n, 0, 0, 0)),
            # Fused weight / bias stay resident (constant block index).
            pl.BlockSpec((Kp, Cout), lambda n, t: (0, 0)),
            pl.BlockSpec((1, Cout), lambda n, t: (0, 0)),
        ],
        # Trailing block dims equal the true (Wo, Cout): no padded HBM writeback.
        out_specs=pl.BlockSpec((1, 1, Wo, Cout), lambda n, t: (n, t, 0, 0)),
        compiler_params=pltpu.CompilerParams(
            dimension_semantics=("parallel", "parallel")),
    )(x_s2d, w_fused, b2)

    return jnp.transpose(out, (0, 3, 1, 2))       # NHWC -> NCHW, once


class CrossEmbedLayer:
    """JAX/Pallas port of the PyTorch CrossEmbedLayer (forward only)."""

    def __init__(self, dim_in, dim_out, kernel_size, stride=2, key=None):
        kernel_size = sorted(kernel_size)
        num_scales = len(kernel_size)
        dim_scales = [int(dim_out / 2 ** i) for i in range(1, num_scales)]
        dim_scales = [*dim_scales, dim_out - sum(dim_scales)]
        self.stride = stride
        self.params = []
        if key is None:
            key = jax.random.PRNGKey(0)
        for kern, dim_scale in zip(kernel_size, dim_scales):
            key, k_w, k_b = jax.random.split(key, 3)
            fan_in = dim_in * kern * kern
            bound = 1.0 / (fan_in ** 0.5)          # deterministic Conv2d-style init
            w = jax.random.uniform(k_w, (dim_scale, dim_in, kern, kern),
                                   jnp.float32, -bound, bound)
            b = jax.random.uniform(k_b, (dim_scale,), jnp.float32, -bound, bound)
            pad = (kern - stride) // 2
            self.params.append((w, b, kern, pad))
        self.kmax = kernel_size[-1]
        # One-time parameter fusion (branch weights -> single matmul operand).
        self.w_fused, self.b_fused = _build_fused_weight(
            self.params, stride, self.kmax, dim_in)

    def __call__(self, x):
        # torch.cat(dim=1) requires all branches to agree on (Ho, Wo); check it.
        _n, _c, H, W = x.shape
        hw = {(_branch_out_hw(H, k, p, self.stride),
               _branch_out_hw(W, k, p, self.stride))
              for (_w, _b, k, p) in self.params}
        assert len(hw) == 1, f"branches disagree on output spatial size: {hw}"
        return _fused_cross_embed(x, self.w_fused, self.b_fused,
                                  stride=self.stride, kmax=self.kmax)


def _ref_conv(x, w, b, s, p):
    out = jax.lax.conv_general_dilated(
        x, w, window_strides=(s, s), padding=[(p, p), (p, p)],
        dimension_numbers=("NCHW", "OIHW", "NCHW"))
    return out + b[None, :, None, None]


if __name__ == "__main__":
    key = jax.random.PRNGKey(0)
    k_x, k_params = jax.random.split(key)

    # batch=2, dim_in=4, H=W=16, dim_out=32, kernels (3,5,7), stride=2 -> (2,32,7,7)
    x = jax.random.normal(k_x, (2, 4, 16, 16), jnp.float32)
    layer = CrossEmbedLayer(dim_in=4, dim_out=32, kernel_size=(3, 5, 7),
                            stride=2, key=k_params)

    out = jax.block_until_ready(layer(x))

    # Cross-check against the XLA conv reference (same semantics as PyTorch).
    ref = jnp.concatenate(
        [_ref_conv(x, w, b, layer.stride, p) for (w, b, _k, p) in layer.params],
        axis=1)
    assert out.shape == (2, 32, 7, 7), out.shape
    # bf16 operands in the kernel -> loosened tolerance vs the f32 reference.
    assert jnp.allclose(out, ref, atol=2e-2, rtol=2e-2), \
        float(jnp.max(jnp.abs(out - ref)))

    print("KERNEL_OK")
</pallas_src>

<mosaic_0001>
module attributes {stable_mosaic.version = 11 : i64} {
  func.func @kernel(%arg0: i32, %arg1: i32, %arg2: memref<1x10x10x16xbf16, #tpu.memory_space<vmem>>, %arg3: memref<256x32xbf16, #tpu.memory_space<vmem>>, %arg4: memref<1x32xf32, #tpu.memory_space<vmem>>, %arg5: memref<1x1x7x32xf32, #tpu.memory_space<vmem>>) attributes {dimension_semantics = [#tpu.dimension_semantics<parallel>, #tpu.dimension_semantics<parallel>], iteration_bounds = array<i64: 2, 7>, scalar_prefetch = 0 : i64, scratch_operands = 0 : i64, tpu.core_type = #tpu.core_type<tc>, window_params = [{transform_indices = @transform_0, window_bounds = array<i64: 1, 10, 10, 16>}, {pipeline_mode = #tpu.pipeline_mode<synchronous>, transform_indices = @transform_1, window_bounds = array<i64: 256, 32>}, {pipeline_mode = #tpu.pipeline_mode<synchronous>, transform_indices = @transform_2, window_bounds = array<i64: 1, 32>}, {transform_indices = @transform_3, window_bounds = array<i64: 1, 1, 7, 32>}]} {
    %c0_i32 = arith.constant 0 : i32
    %0 = arith.addi %arg1, %c0_i32 : i32
    %c0 = arith.constant 0 : index
    %1 = arith.index_cast %0 : i32 to index
    %c0_0 = arith.constant 0 : index
    %c0_1 = arith.constant 0 : index
    %2 = vector.load %arg2[%c0, %1, %c0_0, %c0_1] : memref<1x10x10x16xbf16, #tpu.memory_space<vmem>>, vector<1x1x7x16xbf16>
    %3 = vector.shape_cast %2 : vector<1x1x7x16xbf16> to vector<7x16xbf16>
    %c0_i32_2 = arith.constant 0 : i32
    %4 = arith.addi %arg1, %c0_i32_2 : i32
    %c0_3 = arith.constant 0 : index
    %5 = arith.index_cast %4 : i32 to index
    %c1 = arith.constant 1 : index
    %c0_4 = arith.constant 0 : index
    %6 = vector.load %arg2[%c0_3, %5, %c1, %c0_4] : memref<1x10x10x16xbf16, #tpu.memory_space<vmem>>, vector<1x1x7x16xbf16>
    %7 = vector.shape_cast %6 : vector<1x1x7x16xbf16> to vector<7x16xbf16>
    %c0_i32_5 = arith.constant 0 : i32
    %8 = arith.addi %arg1, %c0_i32_5 : i32
    %c0_6 = arith.constant 0 : index
    %9 = arith.index_cast %8 : i32 to index
    %c2 = arith.constant 2 : index
    %c0_7 = arith.constant 0 : index
    %10 = vector.load %arg2[%c0_6, %9, %c2, %c0_7] : memref<1x10x10x16xbf16, #tpu.memory_space<vmem>>, vector<1x1x7x16xbf16>
    %11 = vector.shape_cast %10 : vector<1x1x7x16xbf16> to vector<7x16xbf16>
    %c0_i32_8 = arith.constant 0 : i32
    %12 = arith.addi %arg1, %c0_i32_8 : i32
    %c0_9 = arith.constant 0 : index
    %13 = arith.index_cast %12 : i32 to index
    %c3 = arith.constant 3 : index
    %c0_10 = arith.constant 0 : index
    %14 = vector.load %arg2[%c0_9, %13, %c3, %c0_10] : memref<1x10x10x16xbf16, #tpu.memory_space<vmem>>, vector<1x1x7x16xbf16>
    %15 = vector.shape_cast %14 : vector<1x1x7x16xbf16> to vector<7x16xbf16>
    %c1_i32 = arith.constant 1 : i32
    %16 = arith.addi %arg1, %c1_i32 : i32
    %c0_11 = arith.constant 0 : index
    %17 = arith.index_cast %16 : i32 to index
    %c0_12 = arith.constant 0 : index
    %c0_13 = arith.constant 0 : index
    %18 = vector.load %arg2[%c0_11, %17, %c0_12, %c0_13] : memref<1x10x10x16xbf16, #tpu.memory_space<vmem>>, vector<1x1x7x16xbf16>
    %19 = vector.shape_cast %18 : vector<1x1x7x16xbf16> to vector<7x16xbf16>
    %c1_i32_14 = arith.constant 1 : i32
    %20 = arith.addi %arg1, %c1_i32_14 : i32
    %c0_15 = arith.constant 0 : index
    %21 = arith.index_cast %20 : i32 to index
    %c1_16 = arith.constant 1 : index
    %c0_17 = arith.constant 0 : index
    %22 = vector.load %arg2[%c0_15, %21, %c1_16, %c0_17] : memref<1x10x10x16xbf16, #tpu.memory_space<vmem>>, vector<1x1x7x16xbf16>
    %23 = vector.shape_cast %22 : vector<1x1x7x16xbf16> to vector<7x16xbf16>
    %c1_i32_18 = arith.constant 1 : i32
    %24 = arith.addi %arg1, %c1_i32_18 : i32
    %c0_19 = arith.constant 0 : index
    %25 = arith.index_cast %24 : i32 to index
    %c2_20 = arith.constant 2 : index
    %c0_21 = arith.constant 0 : index
    %26 = vector.load %arg2[%c0_19, %25, %c2_20, %c0_21] : memref<1x10x10x16xbf16, #tpu.memory_space<vmem>>, vector<1x1x7x16xbf16>
    %27 = vector.shape_cast %26 : vector<1x1x7x16xbf16> to vector<7x16xbf16>
    %c1_i32_22 = arith.constant 1 : i32
    %28 = arith.addi %arg1, %c1_i32_22 : i32
    %c0_23 = arith.constant 0 : index
    %29 = arith.index_cast %28 : i32 to index
    %c3_24 = arith.constant 3 : index
    %c0_25 = arith.constant 0 : index
    %30 = vector.load %arg2[%c0_23, %29, %c3_24, %c0_25] : memref<1x10x10x16xbf16, #tpu.memory_space<vmem>>, vector<1x1x7x16xbf16>
    %31 = vector.shape_cast %30 : vector<1x1x7x16xbf16> to vector<7x16xbf16>
    %c2_i32 = arith.constant 2 : i32
    %32 = arith.addi %arg1, %c2_i32 : i32
    %c0_26 = arith.constant 0 : index
    %33 = arith.index_cast %32 : i32 to index
    %c0_27 = arith.constant 0 : index
    %c0_28 = arith.constant 0 : index
    %34 = vector.load %arg2[%c0_26, %33, %c0_27, %c0_28] : memref<1x10x10x16xbf16, #tpu.memory_space<vmem>>, vector<1x1x7x16xbf16>
    %35 = vector.shape_cast %34 : vector<1x1x7x16xbf16> to vector<7x16xbf16>
    %c2_i32_29 = arith.constant 2 : i32
    %36 = arith.addi %arg1, %c2_i32_29 : i32
    %c0_30 = arith.constant 0 : index
    %37 = arith.index_cast %36 : i32 to index
    %c1_31 = arith.constant 1 : index
    %c0_32 = arith.constant 0 : index
    %38 = vector.load %arg2[%c0_30, %37, %c1_31, %c0_32] : memref<1x10x10x16xbf16, #tpu.memory_space<vmem>>, vector<1x1x7x16xbf16>
    %39 = vector.shape_cast %38 : vector<1x1x7x16xbf16> to vector<7x16xbf16>
    %c2_i32_33 = arith.constant 2 : i32
    %40 = arith.addi %arg1, %c2_i32_33 : i32
    %c0_34 = arith.constant 0 : index
    %41 = arith.index_cast %40 : i32 to index
    %c2_35 = arith.constant 2 : index
    %c0_36 = arith.constant 0 : index
    %42 = vector.load %arg2[%c0_34, %41, %c2_35, %c0_36] : memref<1x10x10x16xbf16, #tpu.memory_space<vmem>>, vector<1x1x7x16xbf16>
    %43 = vector.shape_cast %42 : vector<1x1x7x16xbf16> to vector<7x16xbf16>
    %c2_i32_37 = arith.constant 2 : i32
    %44 = arith.addi %arg1, %c2_i32_37 : i32
    %c0_38 = arith.constant 0 : index
    %45 = arith.index_cast %44 : i32 to index
    %c3_39 = arith.constant 3 : index
    %c0_40 = arith.constant 0 : index
    %46 = vector.load %arg2[%c0_38, %45, %c3_39, %c0_40] : memref<1x10x10x16xbf16, #tpu.memory_space<vmem>>, vector<1x1x7x16xbf16>
    %47 = vector.shape_cast %46 : vector<1x1x7x16xbf16> to vector<7x16xbf16>
    %c3_i32 = arith.constant 3 : i32
    %48 = arith.addi %arg1, %c3_i32 : i32
    %c0_41 = arith.constant 0 : index
    %49 = arith.index_cast %48 : i32 to index
    %c0_42 = arith.constant 0 : index
    %c0_43 = arith.constant 0 : index
    %50 = vector.load %arg2[%c0_41, %49, %c0_42, %c0_43] : memref<1x10x10x16xbf16, #tpu.memory_space<vmem>>, vector<1x1x7x16xbf16>
    %51 = vector.shape_cast %50 : vector<1x1x7x16xbf16> to vector<7x16xbf16>
    %c3_i32_44 = arith.constant 3 : i32
    %52 = arith.addi %arg1, %c3_i32_44 : i32
    %c0_45 = arith.constant 0 : index
    %53 = arith.index_cast %52 : i32 to index
    %c1_46 = arith.constant 1 : index
    %c0_47 = arith.constant 0 : index
    %54 = vector.load %arg2[%c0_45, %53, %c1_46, %c0_47] : memref<1x10x10x16xbf16, #tpu.memory_space<vmem>>, vector<1x1x7x16xbf16>
    %55 = vector.shape_cast %54 : vector<1x1x7x16xbf16> to vector<7x16xbf16>
    %c3_i32_48 = arith.constant 3 : i32
    %56 = arith.addi %arg1, %c3_i32_48 : i32
    %c0_49 = arith.constant 0 : index
    %57 = arith.index_cast %56 : i32 to index
    %c2_50 = arith.constant 2 : index
    %c0_51 = arith.constant 0 : index
    %58 = vector.load %arg2[%c0_49, %57, %c2_50, %c0_51] : memref<1x10x10x16xbf16, #tpu.memory_space<vmem>>, vector<1x1x7x16xbf16>
    %59 = vector.shape_cast %58 : vector<1x1x7x16xbf16> to vector<7x16xbf16>
    %c3_i32_52 = arith.constant 3 : i32
    %60 = arith.addi %arg1, %c3_i32_52 : i32
    %c0_53 = arith.constant 0 : index
    %61 = arith.index_cast %60 : i32 to index
    %c3_54 = arith.constant 3 : index
    %c0_55 = arith.constant 0 : index
    %62 = vector.load %arg2[%c0_53, %61, %c3_54, %c0_55] : memref<1x10x10x16xbf16, #tpu.memory_space<vmem>>, vector<1x1x7x16xbf16>
    %63 = vector.shape_cast %62 : vector<1x1x7x16xbf16> to vector<7x16xbf16>
    %64 = tpu.concatenate %3, %7, %11, %15, %19, %23, %27, %31, %35, %39, %43, %47, %51, %55, %59, %63 in 1 : vector<7x16xbf16>, vector<7x16xbf16>, vector<7x16xbf16>, vector<7x16xbf16>, vector<7x16xbf16>, vector<7x16xbf16>, vector<7x16xbf16>, vector<7x16xbf16>, vector<7x16xbf16>, vector<7x16xbf16>, vector<7x16xbf16>, vector<7x16xbf16>, vector<7x16xbf16>, vector<7x16xbf16>, vector<7x16xbf16>, vector<7x16xbf16> -> vector<7x256xbf16>
    %c0_56 = arith.constant 0 : index
    %c0_57 = arith.constant 0 : index
    %65 = vector.load %arg3[%c0_56, %c0_57] : memref<256x32xbf16, #tpu.memory_space<vmem>>, vector<256x32xbf16>
    %cst = arith.constant dense<0.000000e+00> : vector<7x32xf32>
    %66 = tpu.matmul %64, %65, %cst {dimension_numbers = #tpu.dot_dimension_numbers<[1], [0], [0], [1], [0, 0, 1, 1], [], []>} : vector<7x256xbf16>, vector<256x32xbf16>, vector<7x32xf32> -> vector<7x32xf32>
    %c0_58 = arith.constant 0 : index
    %c0_59 = arith.constant 0 : index
    %67 = vector.load %arg4[%c0_58, %c0_59] : memref<1x32xf32, #tpu.memory_space<vmem>>, vector<1x32xf32>
    %68 = vector.broadcast %67 : vector<1x32xf32> to vector<7x32xf32>
    %69 = arith.addf %66, %68 : vector<7x32xf32>
    %c0_60 = arith.constant 0 : index
    %c0_61 = arith.constant 0 : index
    %c0_62 = arith.constant 0 : index
    %c0_63 = arith.constant 0 : index
    %70 = vector.load %arg5[%c0_60, %c0_61, %c0_62, %c0_63] : memref<1x1x7x32xf32, #tpu.memory_space<vmem>>, vector<1x1x7x32xf32>
    %71 = vector.shape_cast %70 : vector<1x1x7x32xf32> to vector<7x32xf32>
    %72 = vector.shape_cast %69 : vector<7x32xf32> to vector<1x1x7x32xf32>
    tpu.vector_store %arg5[%c0_60, %c0_61, %c0_62, %c0_63], %72 {strides = array<i32>} : memref<1x1x7x32xf32, #tpu.memory_space<vmem>>, vector<1x1x7x32xf32>,
    return
  }
  func.func @transform_0(%arg0: i32, %arg1: i32) -> (i32, i32, i32, i32) {
    %c0_i32 = arith.constant 0 : i32
    %c0_i32_0 = arith.constant 0 : i32
    %c0_i32_1 = arith.constant 0 : i32
    %c0_i32_2 = arith.constant 0 : i32
    return %arg0, %c0_i32, %c0_i32_0, %c0_i32_1 : i32, i32, i32, i32
  }
  func.func @transform_1(%arg0: i32, %arg1: i32) -> (i32, i32) {
    %c0_i32 = arith.constant 0 : i32
    %c0_i32_0 = arith.constant 0 : i32
    %c0_i32_1 = arith.constant 0 : i32
    return %c0_i32, %c0_i32_0 : i32, i32
  }
  func.func @transform_2(%arg0: i32, %arg1: i32) -> (i32, i32) {
    %c0_i32 = arith.constant 0 : i32
    %c0_i32_0 = arith.constant 0 : i32
    %c0_i32_1 = arith.constant 0 : i32
    return %c0_i32, %c0_i32_0 : i32, i32
  }
  func.func @transform_3(%arg0: i32, %arg1: i32) -> (i32, i32, i32, i32) {
    %c0_i32 = arith.constant 0 : i32
    %c0_i32_0 = arith.constant 0 : i32
    %c0_i32_1 = arith.constant 0 : i32
    return %arg0, %arg1, %c0_i32, %c0_i32_0 : i32, i32, i32, i32
  }
}

</mosaic_0001>

<bundles_post_ra>
// kernel: _fused_cross_embed.1
= control target key start
LH: loop header
LB: loop body
LE: loop exit
PB: predicated region body
PF: predicated region fallthrough
CT: control target
= control target key end

     0   :  { %s861_s12 = smov 0   ;;  %s863_s13 = smov 0   ;;  %s997_s0 = inlined_call_operand.vmem [shape: bf16[2,10,10,16], index: 0, kind: input, shape index: {}]   ;;  %s998_s1 = inlined_call_operand.vmem [shape: bf16[256,32], index: 1, kind: input, shape index: {}]   ;;  %s999_s2 = inlined_call_operand.vmem [shape: f32[1,32], index: 2, kind: input, shape index: {}]   ;;  %s1000_s3 = inlined_call_operand.vmem [shape: f32[2,7,7,32], index: 3, kind: output, shape index: {}]  }
   0x1   :  { %s865_s14 = smov 0   ;;  %s867_s15 = smov 0  }
   0x2   :  { %s869_s16 = smov 0  }
   0x3 LB: > { %s22_s17 = sadd.s32 1, %s824_s14  ;;  %s25_s18 = sadd.s32 1, %s828_s15  ;;  %s832_s16 = sphi %s869_s16, %s13_s16   ;;  %s828_s15 = sphi %s867_s15, %s1004_s15   ;;  %s824_s14 = sphi %s865_s14, %s1003_s14   ;;  %s820_s13 = sphi %s863_s13, %s1002_s13   ;;  %s816_s12 = sphi %s861_s12, %s1001_s12  }
   0x4   : > { %p23_p0 = scmp.ge.s32.totalorder %s22_s17, 7  ;;  %p654_p1 = scmp.ge.s32.totalorder %s832_s16, 1 }
   0x5   : > { %p151_p2 = scmp.lt.s32.totalorder %s832_s16, 15 }
   0x6   : > { %s1006_s17 = smov (%p23_p0, %s22_s17), 0  ;;  %s1008_s18 = smov (!%p23_p0, %s25_s18), %s828_s15 }
   0x7   : > { %p152_p3 = pnand %p654_p1, %p151_p2  ;;  %p27_p4 = scmp.ge.s32.totalorder %s1008_s18, 2 }
   0x8   : > { %p178_p5 = scmp.lt.s32.totalorder (!%p152_p3), %s820_s13, 1  ;;  %v778_v0 = vld [vmem:[%s998_s1 + $0x40] sm:$0xff] (!%p152_p3)   ;;  %v780_v2 = vld [vmem:[%s998_s1 + $0x48] sm:$0xff] (!%p152_p3)   ;;  %s698_s26 = sshll.u32 (!%p152_p3), %s816_s12, 3  ;;  %v782_v4 = vld [vmem:[%s998_s1 + $0x50] sm:$0xff] (!%p152_p3)   ;;  %vm343_vm0 = vcmask (!%p152_p3), 130048  }
   0x9   : > { %s1010_s18 = smov (%p27_p4, %s1008_s18), 0  ;;  %155 = sbr.rel (%p152_p3) target bundleno = 386 (0x182), region = 32 }
   0xa   : > { %v779_v1 = vld [vmem:[%s998_s1] sm:$0xff] (!%p152_p3)   ;;  %699 = vmatprep.subr.bf16.mxu0 (!%p152_p3), %v778_v0  ;;  %v781_v3 = vld [vmem:[%s998_s1 + $0x8] sm:$0xff] (!%p152_p3)   ;;  %v783_v5 = vld [vmem:[%s998_s1 + $0x10] sm:$0xff] (!%p152_p3)   ;;  %s834_s19 = smov (!%p152_p3), 64   ;;  %s835_s22 = smov (!%p152_p3), 32   ;;  %vm347_vm1 = vcmask (!%p152_p3), 261120  }
   0xb   : > { %700 = vmatpush3.bf16.msra.mxu0 (!%p152_p3), %v779_v1  ;;  %v784_v6 = vld [vmem:[%s998_s1 + $0x58] sm:$0xff] (!%p152_p3)   ;;  %s836_s23 = smov (!%p152_p3), 16   ;;  %v786_v40 = vld [vmem:[%s998_s1 + $0x60] sm:$0xff] (!%p152_p3)   ;;  %s837_s28 = smov (!%p152_p3), 48   ;;  %v788_v49 = vld [vmem:[%s998_s1 + $0x68] sm:$0xff] (!%p152_p3)   ;;  %vm350_vm2 = vcmask (!%p152_p3), 392192  }
   0xc   : > { %701 = vmatprep.subr.bf16.mxu0 (!%p152_p3), %v780_v2  ;;  %v785_v16 = vld [vmem:[%s998_s1 + $0x18] sm:$0xff] (!%p152_p3)   ;;  %v787_v43 = vld [vmem:[%s998_s1 + $0x20] sm:$0xff] (!%p152_p3)   ;;  %v789_v51 = vld [vmem:[%s998_s1 + $0x28] sm:$0xff] (!%p152_p3)   ;;  %s838_s8 = smov (!%p152_p3), 80   ;;  %s839_s20 = smov (!%p152_p3), 96   ;;  %vm353_vm3 = vcmask (!%p152_p3), 523264  }
   0xd   : > { %v790_v53 = vld [vmem:[%s998_s1 + $0x70] sm:$0xff] (!%p152_p3)   ;;  %v792_v59 = vld [vmem:[%s998_s1 + $0x78] sm:$0xff] (!%p152_p3)   ;;  %vm356_vm4 = vcmask (!%p152_p3), 654336   ;;  %vm359_vm5 = vcmask (!%p152_p3), 785408   ;;  %vm362_vm6 = vcmask (!%p152_p3), 916480   ;;  %p185_p6 = scmp.lt.s32.totalorder (!%p152_p3), %s816_s12, 6 }
   0xe   : > { %v791_v58 = vld [vmem:[%s998_s1 + $0x30] sm:$0xff] (!%p152_p3)   ;;  %v793_v0 = vld [vmem:[%s998_s1 + $0x38] sm:$0xff] (!%p152_p3)   ;;  %vm557_vm7 = vcmask (!%p152_p3), 260096  }
   0xf   : > { %702 = vmatpush3.bf16.msra.mxu0 (!%p152_p3), %v781_v3 }
  0x10   : > { %s1012_s13 = smov (!%p178_p5, %s820_s13), 1  ;;  %703 = vmatprep.subr.bf16.mxu0 %v782_v4  ;;  %s1014_s12 = smov (!%p185_p6, %s816_s12), 6 }
  0x11   : > { %s721_s25 = smul.u32 80, %s1012_s13 }
  0x12   : > { %s722_s24 = smul.u32 7, %s1012_s13 }
  0x13   : > { %s182_s6 = scalar_lea.vmem %s997_s0, %s721_s25  ;;  %704 = vmatpush3.bf16.msra.mxu0 %v783_v5 }
  0x14   : > { %s918_s9 = scalar_lea.vmem %s182_s6, %s698_s26  ;;  %705 = vmatprep.subr.bf16.mxu0 %v784_v6  ;;  %s188_s25 = sadd.s32 %s722_s24, %s1014_s12 }
  0x15   : > { %v770_v7 = vld [vmem:[%s918_s9 + $0x8] ss:$0 sps:$4 sm:$0xff]   ;;  %v925_v8 = vld [vmem:[%s918_s9 + $0x18] ss:$0 sps:$4 sm:$0xff]   ;;  %v772_v9 = vld [vmem:[%s918_s9 + $0x10] sm:$0x1e]  }
  0x16   : > { %252 = vrot.lane.b32.xlu1 %v770_v7, %s834_s19  ;;  %v929_v10 = vld [vmem:[%s918_s9 + $0x10] sm:$0xf]  ;;  %314 = vrot.lane.b32.xlu0 %v925_v8, %s834_s19  ;;  %v774_v12 = vld [vmem:[%s918_s9] sm:$0x1e]   ;;  %v298_v14 = vrot.slane %v772_v9, 1  ;;  %v302_v23 = vshrl.u32 %v772_v9, 16 }
  0x17   : > { %v675_v11 = vcombine.low %v929_v10, %v929_v10  ;;  %v936_v13 = vld [vmem:[%s918_s9] sm:$0xf]  ;;  %v240_v19 = vshrl.u32 %v774_v12, 16  ;;  %v236_v20 = vrot.slane %v774_v12, 1  ;;  %v243_v22 = vshll.u32 %v774_v12, 16  ;;  %706 = vmatpush3.bf16.msra.mxu0 %v785_v16  ;;  %s656_s26 = sshll.u32 %s188_s25, 3 }
  0x18   : > { %v671_v15 = vcombine.low %v936_v13, %v936_v13  ;;  %v305_v27 = vshll.u32 %v772_v9, 16  ;;  %v257_v30 = vshll.u32 %v770_v7, 16  ;;  %v776_v32 = vld [vmem:[%s918_s9 + $0x8] sm:$0x1e]   ;;  %v255_v34 = vshrl.u32 %v770_v7, 16  ;;  %707 = vmatprep.subr.bf16.mxu0 %v786_v40  ;;  %s190_s4 = scalar_lea.vmem %s1000_s3, %s656_s26 }
  0x19   : > { %v285_v17 = vshrl.u32 %v675_v11, 16  ;;  %v287_v18 = vshll.u32 %v675_v11, 16  ;;  %v242_v26 = vrot.slane %v240_v19, 1  ;;  %v245_v29 = vrot.slane %v243_v22, 2  ;;  %v777_v42 = vld [vmem:[%s918_s9 + $0x18] sm:$0x1e]  }
  0x1a   : > { %299 = vrot.lane.b32.xlu1 %v298_v14, %s835_s22  ;;  %v225_v21 = vshll.u32 %v671_v15, 16  ;;  %v223_v25 = vshrl.u32 %v671_v15, 16  ;;  %v259_v35 = vrot.slane %v257_v30, 1  ;;  %v304_v37 = vrot.slane %v302_v23, 1 }
  0x1b   : > { %v289_v24 = vrot.slane %v287_v18, 1  ;;  %v246_v33 = vor.u32 %v245_v29, %v242_v26  ;;  %v307_v38 = vrot.slane %v305_v27, 2  ;;  %v319_v39 = vshll.u32 %v925_v8, 16  ;;  %708 = vmatpush3.bf16.msra.mxu0 %v787_v43 }
  0x1c   : > { %v227_v28 = vrot.slane %v225_v21, 1  ;;  %v317_v41 = vshrl.u32 %v925_v8, 16  ;;  %v260_v44 = vor.u32 %v259_v35, %v255_v34  ;;  %v272_v45 = vshrl.u32 %v776_v32, 16  ;;  %709 = vmatprep.subr.bf16.mxu0 %v788_v49 }
  0x1d   : > { %v290_v31 = vor.u32 %v289_v24, %v285_v17  ;;  %v275_v46 = vshll.u32 %v776_v32, 16  ;;  %v308_v47 = vor.u32 %v307_v38, %v304_v37  ;;  %v321_v48 = vrot.slane %v319_v39, 1 }
  0x1e   : > { %237 = vrot.lane.b32.xlu1 %v236_v20, %s835_s22  ;;  %v228_v36 = vor.u32 %v227_v28, %v223_v25  ;;  %v268_v50 = vrot.slane %v776_v32, 1  ;;  %v334_v52 = vshrl.u32 %v777_v42, 16  ;;  %v274_v54 = vrot.slane %v272_v45, 1 }
  0x1f   : > { %291 = vrot.lane.b32.xlu0 %v290_v31, %s836_s23  ;;  %v277_v55 = vrot.slane %v275_v46, 2  ;;  %v322_v56 = vor.u32 %v321_v48, %v317_v41  ;;  %v337_v57 = vshll.u32 %v777_v42, 16  ;;  %710 = vmatpush3.bf16.msra.mxu0 %v789_v51  ;;  %v330_v61 = vrot.slane %v777_v42, 1  ;;  %v679_v31 = vld [vmem:[%s999_s2] ss:$0 sm:$0xff] }
  0x20   : > { %711 = vmatprep.subr.bf16.mxu0 %v790_v53  ;;  %v336_v62 = vrot.slane %v334_v52, 1 }
  0x21   : > { %v278_v60 = vor.u32 %v277_v55, %v274_v54  ;;  %v339_v63 = vrot.slane %v337_v57, 2 }
  0x22   : > { %247 = vrot.lane.b32.xlu1 %v246_v33, %s837_s28 }
  0x23   : > { %229 = vrot.lane.b32.xlu0 %v228_v36, %s836_s23  ;;  %712 = vmatpush3.bf16.msra.mxu0 %v791_v58  ;;  %s840_s23 = smov 112   ;;  %v340_v1 = vor.u32 %v339_v63, %v336_v62 }
  0x24   : > { %713 = vmatprep.subr.bf16.mxu0 %v792_v59 }
  0x26   : > { %261 = vrot.lane.b32.xlu1 %v260_v44, %s838_s8 }
  0x27   : > { %309 = vrot.lane.b32.xlu0 %v308_v47, %s837_s28  ;;  %714 = vmatpush3.bf16.msra.mxu0 %v793_v0 }
  0x2a   : > { %269 = vrot.lane.b32.xlu1 %v268_v50, %s839_s20 }
  0x2b   : > { %323 = vrot.lane.b32.xlu0 %v322_v56, %s838_s8 }
  0x2e   : > { %279 = vrot.lane.b32.xlu1 %v278_v60, %s840_s23 }
  0x2f   : > { %331 = vrot.lane.b32.xlu0 %v330_v61, %s839_s20 }
  0x33   : > { %341 = vrot.lane.b32.xlu0 %v340_v1, %s840_s23 }
  0x88   : > { %v253_v2 = vpop.permute.xlu1 %252  ;;  %v315_v3 = vpop.permute.xlu0 %314 }
  0x8c   : > { %v300_v4 = vpop.permute.xlu1 %299 }
  0x90   : > { %v238_v5 = vpop.permute.xlu1 %237 }
  0x91   : > { %v292_v6 = vpop.permute.xlu0 %291 }
  0x92   : > { %v368_v14 = vsel %vm343_vm0, %v929_v10, %v292_v6 }
  0x93   : > { %v370_v19 = vsel %vm347_vm1, %v368_v14, %v300_v4 }
  0x94   : > { %v248_v7 = vpop.permute.xlu1 %247 }
  0x95   : > { %v230_v8 = vpop.permute.xlu0 %229 }
  0x96   : > { %v346_v11 = vsel %vm343_vm0, %v936_v13, %v230_v8 }
  0x97   : > { %v349_v15 = vsel %vm347_vm1, %v346_v11, %v238_v5 }
  0x98   : > { %v262_v9 = vpop.permute.xlu1 %261  ;;  %v352_v18 = vsel %vm350_vm2, %v349_v15, %v248_v7 }
  0x99   : > { %v310_v12 = vpop.permute.xlu0 %309  ;;  %v355_v22 = vsel %vm353_vm3, %v352_v18, %v253_v2 }
  0x9a   : > { %v372_v20 = vsel %vm350_vm2, %v370_v19, %v310_v12  ;;  %v358_v10 = vsel %vm356_vm4, %v355_v22, %v262_v9 }
  0x9b   : > { %v374_v23 = vsel %vm353_vm3, %v372_v20, %v315_v3 }
  0x9c   : > { %v270_v17 = vpop.permute.xlu1 %269 }
  0x9d   : > { %v324_v16 = vpop.permute.xlu0 %323  ;;  %v361_v27 = vsel %vm359_vm5, %v358_v10, %v270_v17 }
  0x9e   : > { %v376_v13 = vsel %vm356_vm4, %v374_v23, %v324_v16 }
  0xa0   : > { %v280_v24 = vpop.permute.xlu1 %279 }
  0xa1   : > { %v332_v21 = vpop.permute.xlu0 %331  ;;  %v364_v29 = vsel %vm362_vm6, %v361_v27, %v280_v24 }
  0xa2   : > { %v378_v25 = vsel %vm359_vm5, %v376_v13, %v332_v21 }
  0xa5   : > { %v342_v26 = vpop.permute.xlu0 %341 }
  0xa6   : > { %v380_v28 = vsel %vm362_vm6, %v378_v25, %v342_v26 }
  0xa7   : > { %549 = vmatprep.mubr.bf16.mxu0 %v380_v28 }
  0xa8   : > { %550 = vmatmul.mubr.bf16.vlgmr.msra.gmra.mrb[0].mxu0 %v364_v29 }
 0x17b   : > { %v715_v30 = vpop.f32.mrb[0].mxu0 }
 0x17c   : > { %v716_v32 = vpop.f32.mrb[1].mxu0 }
 0x17d   : > { %v717_v33 = vadd.f32 %v716_v32, %v715_v30  ;;  %v718_v34 = vpop.f32.mrb[2].mxu0 }
 0x17e   : > { %v719_v35 = vpop.f32.mrb[3].mxu0 }
 0x17f   : > { %v552_v36 = vadd.f32 %v717_v33, %v679_v31 }
 0x181   : > { %558 = vst.msk [vmem:[%s190_s4] sm:$0x7f] %vm557_vm7, %v552_v36 }
 0x182 PF: > { %s13_s16 = sadd.s32 1, %s832_s16   ;;  %s1001_s12 = smov %s824_s14 }
 0x183   : > { %p10_p7 = scmp.ge.s32.totalorder %s13_s16, 16   ;;  %s1002_s13 = smov %s828_s15 }
 0x184   : > { %s1003_s14 = smov %s1006_s17  ;;  %s1004_s15 = smov %s1010_s18 }
 0x185   :  { %12 = sbr.rel (!%p10_p7) target bundleno = 3 (0x3), region = 66 }

</bundles_post_ra>
